<compile_context>
chip_gen: v5e
topology: v5e:2x2
jax: 0.10.0
libtpu: 0.0.40
codegen_flags: <defaults>
</compile_context>

<pallas_src>
import numpy as np
import jax
import jax.numpy as jnp
from jax.experimental import pallas as pl
from jax.experimental.pallas import tpu as pltpu


def _round_up(n, m):
    return ((n + m - 1) // m) * m


# ----------------------------------------------------------------------------
# Fused Pallas kernel: embedding -> GRU -> fc head -> sigmoid
# ----------------------------------------------------------------------------
def _make_kernel(Bp, S, V, H, F, St, off):
    """Build the kernel with all structural constants closed over statically."""
    SB = S * Bp
    H2 = 2 * H

    def kernel(codes_ref, feats_ref, static_ref, gru_ref, fc_ref, out_ref):
        # ---- unpack the GRU weight slab (static row/col slices, single DMA)
        w_feat = gru_ref[off["wf"]:off["wf"] + 2 * F + 1, :]       # (2F+1, 3H)
        emb_proj = gru_ref[off["emb"]:off["emb"] + V, :]           # (V, 3H)   pre-folded table
        bi = gru_ref[off["bi"]:off["bi"] + 1, :]                   # (1, 3H)   b_ir+b_hr | b_iz+b_hz | b_in
        bhn = gru_ref[off["bhn"]:off["bhn"] + 1, H2:H2 + H]        # (1, H)
        w_hh = gru_ref[off["whh"]:off["whh"] + H, :]               # (H, 3H)   fused r|z|n

        # ---- embedding gather as a one-hot matmul against the pre-folded table
        codes = codes_ref[...]                                      # (S*Bp, 1) int32
        vocab_ids = jax.lax.broadcasted_iota(jnp.int32, (SB, V), 1)
        onehot = (vocab_ids == codes).astype(jnp.float32)           # (S*Bp, V)

        # ---- fused input projections: all timesteps x all 3 gates, 2 matmuls total
        gx = (jnp.dot(feats_ref[...], w_feat, preferred_element_type=jnp.float32)
              + jnp.dot(onehot, emb_proj, preferred_element_type=jnp.float32)
              + bi)                                                 # (S*Bp, 3H)

        bhn_b = jnp.broadcast_to(bhn, (Bp, H))      # broadcast once, reused every step

        def gate_sigmoid(v):
            # exp + approximate reciprocal live on the EUP slot (no VALU divide)
            return pl.reciprocal(1.0 + jnp.exp(-v), approx=True)

        # ---- GRU recurrence: one (Bp,H)@(H,3H) matmul per step, statically unrolled
        h = jnp.zeros((Bp, H), jnp.float32)
        for t in range(S):
            lo = t * Bp                                             # aligned 8-row group
            gxt = gx[lo:lo + Bp]                                    # (Bp, 3H)
            gh = jnp.dot(h, w_hh, preferred_element_type=jnp.float32)  # (Bp, 3H)
            rz = gate_sigmoid(gxt[:, :H2] + gh[:, :H2])             # fused r|z sigmoid
            r, z = rz[:, :H], rz[:, H:]
            n = jnp.tanh(gxt[:, H2:] + r * (gh[:, H2:] + bhn_b))
            h = (1.0 - z) * n + z * h

        # ---- fc head: Linear -> ReLU -> Linear -> sigmoid
        #      cat([h, static]) @ W1 == h @ W1[:H] + static @ W1[H:]
        w1h = fc_ref[off["w1h"]:off["w1h"] + H, :]                  # (H, FC)
        w1s = fc_ref[off["w1s"]:off["w1s"] + St, :]                 # (St, FC)
        b1 = fc_ref[off["b1"]:off["b1"] + 1, :]                     # (1, FC)
        w2r = fc_ref[off["w2"]:off["w2"] + 1, :]                    # (1, FC) == W2.T
        b2 = fc_ref[off["b2"]:off["b2"] + 1, 0:1]                   # (1, 1)

        hid = (jnp.dot(h, w1h, preferred_element_type=jnp.float32)
               + jnp.dot(static_ref[...], w1s, preferred_element_type=jnp.float32)
               + b1)
        hid = jnp.maximum(hid, 0.0)
        logit = jnp.sum(hid * w2r, axis=-1, keepdims=True) + b2     # (Bp, 1)
        out_ref[...] = 1.0 / (1.0 + jnp.exp(-logit))                # exact sigmoid on output

    return kernel


# ----------------------------------------------------------------------------
# Wrapper: layout plumbing (gate fusion, embedding fold, slab packing) + one call
# ----------------------------------------------------------------------------
def gru_model_forward(params, timevisits, codes, sequences, timestamps, static_vars):
    B, S, F = sequences.shape
    emb_table = params["emb"]                                   # (V, E)
    V, E = emb_table.shape
    wir, wiz, win_, bir, biz, bin_ = params["gru_ih"]           # (D, H), (1, H)
    whr, whz, whn, bhr, bhz, bhn = params["gru_hh"]             # (H, H), (1, H)
    w1, b1, w2, b2 = params["fc"]                               # (H+St,FC),(1,FC),(FC,1),(1,1)
    D = 2 * F + E + 1
    H = whr.shape[0]
    St = static_vars.shape[-1]
    FC = w1.shape[1]
    hp = jax.lax.Precision.HIGHEST

    # ---- pad the batch to one full sublane tile so per-timestep slices are aligned.
    Bp = _round_up(B, 8)
    pad_b = Bp - B

    def pad_batch(a):
        return jnp.pad(a, ((0, pad_b),) + ((0, 0),) * (a.ndim - 1))

    # Time-major flatten: timestep t occupies contiguous rows [t*Bp, (t+1)*Bp).
    def tm_flat(a):
        return jnp.transpose(a, (1, 0, 2)).reshape(S * Bp, a.shape[-1])

    feats = jnp.concatenate(
        [tm_flat(pad_batch(sequences)), tm_flat(pad_batch(timestamps)),
         tm_flat(pad_batch(timevisits))], axis=-1)                  # (S*Bp, 2F+1)
    codes_f = jnp.transpose(pad_batch(codes), (1, 0)).reshape(S * Bp, 1).astype(jnp.int32)
    static_p = pad_batch(static_vars)                               # (Bp, St)

    # ---- fuse the 3 gates along the output dim: columns are [r | z | n].
    w_ih = jnp.concatenate([wir, wiz, win_], axis=1)                # (D, 3H)
    # Split rows to mirror x = [seq, ts, emb, tv] without an in-kernel concat.
    w_feat = jnp.concatenate([w_ih[:2 * F], w_ih[D - 1:]], axis=0)  # (2F+1, 3H)
    w_emb = w_ih[2 * F:D - 1]                                       # (E, 3H)
    # Pre-fold the embedding table into the gate weights (one-time cost).
    emb_proj = jnp.dot(emb_table, w_emb, precision=hp)              # (V, 3H)
    # b_hr / b_hz are purely additive with b_ir / b_iz; b_hn must stay separate.
    bi_fused = jnp.concatenate([bir + bhr, biz + bhz, bin_], axis=1)  # (1, 3H)
    bhn_pad = jnp.pad(bhn, ((0, 0), (2 * H, 0)))                    # (1, 3H), data in cols [2H:3H)
    w_hh = jnp.concatenate([whr, whz, whn], axis=1)                 # (H, 3H)

    def pad_rows(a, rows):
        return jnp.pad(a, ((0, rows - a.shape[0]), (0, 0)))

    # ---- pack all GRU-side constants into ONE slab (one entry DMA), 8-row aligned.
    off = {}
    off["wf"] = 0
    off["emb"] = off["wf"] + _round_up(2 * F + 1, 8)
    off["bi"] = off["emb"] + _round_up(V, 8)
    off["bhn"] = off["bi"] + 8
    off["whh"] = off["bhn"] + 8
    gru_slab = jnp.concatenate([
        pad_rows(w_feat, off["emb"] - off["wf"]),
        pad_rows(emb_proj, off["bi"] - off["emb"]),
        pad_rows(bi_fused, 8),
        pad_rows(bhn_pad, 8),
        pad_rows(w_hh, _round_up(H, 8)),
    ], axis=0)                                                      # (rows, 3H)

    # ---- pack the fc head into ONE slab (one entry DMA).
    off["w1h"] = 0
    off["w1s"] = _round_up(H, 8)
    off["b1"] = off["w1s"] + _round_up(St, 8)
    off["w2"] = off["b1"] + 1
    off["b2"] = off["w2"] + 1
    fc_slab = jnp.concatenate([
        pad_rows(w1[:H], _round_up(H, 8)),                          # (H, FC)
        pad_rows(w1[H:], _round_up(St, 8)),                         # (St, FC)
        b1,                                                         # (1, FC)
        w2.T,                                                       # (1, FC)
        jnp.broadcast_to(b2, (1, FC)),                              # (1, FC)
    ], axis=0)                                                      # (rows, FC)

    kernel = _make_kernel(Bp, S, V, H, F, St, off)

    in_arrays = [codes_f, feats, static_p, gru_slab, fc_slab]
    in_specs = [pl.BlockSpec(tuple(a.shape), lambda i: (0, 0)) for a in in_arrays]

    out = pl.pallas_call(
        kernel,
        out_shape=jax.ShapeDtypeStruct((Bp, 1), jnp.float32),
        grid_spec=pltpu.PrefetchScalarGridSpec(
            num_scalar_prefetch=0,
            grid=(1,),                      # whole model in one invocation, all VMEM-resident
            in_specs=in_specs,
            out_specs=pl.BlockSpec((Bp, 1), lambda i: (0, 0))),
        compiler_params=pltpu.CompilerParams(dimension_semantics=("arbitrary",)),
    )(*in_arrays)
    return out[:B]


# ----------------------------------------------------------------------------
# Pure-JAX reference (PyTorch nn.GRU semantics) for the correctness check
# ----------------------------------------------------------------------------
def _dot_hp(a, b):
    return jnp.dot(a, b, precision=jax.lax.Precision.HIGHEST)


def reference_forward(params, timevisits, codes, sequences, timestamps, static_vars):
    emb = jnp.take(params["emb"], codes, axis=0)                            # (B,S,E)
    x = jnp.concatenate([sequences, timestamps, emb, timevisits], axis=-1)  # (B,S,D)
    wir, wiz, win_, bir, biz, bin_ = params["gru_ih"]
    whr, whz, whn, bhr, bhz, bhn = params["gru_hh"]
    B, S, _ = x.shape
    H = whr.shape[0]
    h = jnp.zeros((B, H), jnp.float32)
    for t in range(S):
        xt = x[:, t, :]
        r = jax.nn.sigmoid(_dot_hp(xt, wir) + bir + _dot_hp(h, whr) + bhr)
        z = jax.nn.sigmoid(_dot_hp(xt, wiz) + biz + _dot_hp(h, whz) + bhz)
        n = jnp.tanh(_dot_hp(xt, win_) + bin_ + r * (_dot_hp(h, whn) + bhn))
        h = (1.0 - z) * n + z * h
    w1, b1, w2, b2 = params["fc"]
    fc_in = jnp.concatenate([h, static_vars], axis=-1)
    hid = jnp.maximum(_dot_hp(fc_in, w1) + b1, 0.0)
    return jax.nn.sigmoid(_dot_hp(hid, w2) + b2)


# ----------------------------------------------------------------------------
# Parameter / input construction
# ----------------------------------------------------------------------------
def _linear(key, din, dout, scale=0.1):
    k1, k2 = jax.random.split(key)
    w = jax.random.normal(k1, (din, dout), jnp.float32) * scale   # = W_pytorch.T
    b = jax.random.normal(k2, (1, dout), jnp.float32) * scale
    return w, b


def make_params(key, vocab, emb_dim, feat, hidden, static, fc_hidden=128, out=1):
    D = 2 * feat + emb_dim + 1
    ks = jax.random.split(key, 9)
    wir, bir = _linear(ks[1], D, hidden)
    wiz, biz = _linear(ks[2], D, hidden)
    win_, bin_ = _linear(ks[3], D, hidden)
    whr, bhr = _linear(ks[4], hidden, hidden)
    whz, bhz = _linear(ks[5], hidden, hidden)
    whn, bhn = _linear(ks[6], hidden, hidden)
    w1, b1 = _linear(ks[7], hidden + static, fc_hidden)
    w2, b2 = _linear(ks[8], fc_hidden, out)
    return {
        "emb": jax.random.normal(ks[0], (vocab, emb_dim), jnp.float32) * 0.1,
        "gru_ih": (wir, wiz, win_, bir, biz, bin_),
        "gru_hh": (whr, whz, whn, bhr, bhz, bhn),
        "fc": (w1, b1, w2, b2),
    }


if __name__ == "__main__":
    # Small shapes consistent with the module: D = 2F + E + 1 = 32.
    B, S, F, E, H, St = 2, 8, 4, 23, 32, 6
    vocab, FC = 50, 128   # fc hidden padded to a lane-friendly multiple of 128

    key = jax.random.PRNGKey(0)
    kp, k1, k2, k3, k4, k5 = jax.random.split(key, 6)
    params = make_params(kp, vocab, E, F, H, St, fc_hidden=FC)

    sequences = jax.random.normal(k1, (B, S, F), jnp.float32)
    timestamps = jax.random.normal(k2, (B, S, F), jnp.float32)
    timevisits = jax.random.normal(k3, (B, S, 1), jnp.float32)
    codes = jax.random.randint(k4, (B, S), 0, vocab, dtype=jnp.int32)
    static_vars = jax.random.normal(k5, (B, St), jnp.float32)

    fwd = jax.jit(gru_model_forward)
    out = jax.block_until_ready(
        fwd(params, timevisits, codes, sequences, timestamps, static_vars))

    ref = reference_forward(params, timevisits, codes, sequences, timestamps, static_vars)
    # Tolerance absorbs MXU f32 multi-pass differences vs. the HIGHEST-precision
    # reference plus the EUP approximate-reciprocal used in the gate sigmoid.
    np.testing.assert_allclose(np.asarray(out), np.asarray(ref), atol=2e-3, rtol=2e-3)

    print("KERNEL_OK")
</pallas_src>

<mosaic_0001>
module attributes {stable_mosaic.version = 11 : i64} {
  func.func @kernel(%arg0: i32, %arg1: memref<64x1xi32, #tpu.memory_space<vmem>>, %arg2: memref<64x9xf32, #tpu.memory_space<vmem>>, %arg3: memref<8x6xf32, #tpu.memory_space<vmem>>, %arg4: memref<120x96xf32, #tpu.memory_space<vmem>>, %arg5: memref<43x128xf32, #tpu.memory_space<vmem>>, %arg6: memref<8x1xf32, #tpu.memory_space<vmem>>) attributes {dimension_semantics = [#tpu.dimension_semantics<arbitrary>], iteration_bounds = array<i64: 1>, scalar_prefetch = 0 : i64, scratch_operands = 0 : i64, tpu.core_type = #tpu.core_type<tc>, window_params = [{pipeline_mode = #tpu.pipeline_mode<synchronous>, transform_indices = @transform_0, window_bounds = array<i64: 64, 1>}, {pipeline_mode = #tpu.pipeline_mode<synchronous>, transform_indices = @transform_1, window_bounds = array<i64: 64, 9>}, {pipeline_mode = #tpu.pipeline_mode<synchronous>, transform_indices = @transform_2, window_bounds = array<i64: 8, 6>}, {pipeline_mode = #tpu.pipeline_mode<synchronous>, transform_indices = @transform_3, window_bounds = array<i64: 120, 96>}, {pipeline_mode = #tpu.pipeline_mode<synchronous>, transform_indices = @transform_4, window_bounds = array<i64: 43, 128>}, {pipeline_mode = #tpu.pipeline_mode<synchronous>, transform_indices = @transform_5, window_bounds = array<i64: 8, 1>}]} {
    %c0 = arith.constant 0 : index
    %c0_0 = arith.constant 0 : index
    %0 = vector.load %arg4[%c0, %c0_0] : memref<120x96xf32, #tpu.memory_space<vmem>>, vector<9x96xf32>
    %c16 = arith.constant 16 : index
    %c0_1 = arith.constant 0 : index
    %1 = vector.load %arg4[%c16, %c0_1] : memref<120x96xf32, #tpu.memory_space<vmem>>, vector<50x96xf32>
    %c72 = arith.constant 72 : index
    %c0_2 = arith.constant 0 : index
    %2 = vector.load %arg4[%c72, %c0_2] : memref<120x96xf32, #tpu.memory_space<vmem>>, vector<1x96xf32>
    %c80 = arith.constant 80 : index
    %c64 = arith.constant 64 : index
    %3 = vector.load %arg4[%c80, %c64] : memref<120x96xf32, #tpu.memory_space<vmem>>, vector<1x32xf32>
    %c88 = arith.constant 88 : index
    %c0_3 = arith.constant 0 : index
    %4 = vector.load %arg4[%c88, %c0_3] : memref<120x96xf32, #tpu.memory_space<vmem>>, vector<32x96xf32>
    %c0_4 = arith.constant 0 : index
    %c0_5 = arith.constant 0 : index
    %5 = vector.load %arg1[%c0_4, %c0_5] : memref<64x1xi32, #tpu.memory_space<vmem>>, vector<64x1xi32>
    %6 = tpu.iota {dimensions = array<i32: 1>} : vector<64x50xi32>
    %7 = vector.broadcast %5 : vector<64x1xi32> to vector<64x50xi32>
    %8 = arith.cmpi eq, %6, %7 : vector<64x50xi32>
    %9 = arith.extui %8 : vector<64x50xi1> to vector<64x50xi32>
    %10 = arith.sitofp %9 : vector<64x50xi32> to vector<64x50xf32>
    %c0_6 = arith.constant 0 : index
    %c0_7 = arith.constant 0 : index
    %11 = vector.load %arg2[%c0_6, %c0_7] : memref<64x9xf32, #tpu.memory_space<vmem>>, vector<64x9xf32>
    %cst = arith.constant dense<0.000000e+00> : vector<64x96xf32>
    %12 = tpu.matmul %11, %0, %cst {dimension_numbers = #tpu.dot_dimension_numbers<[1], [0], [0], [1], [0, 0, 1, 1], [], []>} : vector<64x9xf32>, vector<9x96xf32>, vector<64x96xf32> -> vector<64x96xf32>
    %cst_8 = arith.constant dense<0.000000e+00> : vector<64x96xf32>
    %13 = tpu.matmul %10, %1, %cst_8 {dimension_numbers = #tpu.dot_dimension_numbers<[1], [0], [0], [1], [0, 0, 1, 1], [], []>} : vector<64x50xf32>, vector<50x96xf32>, vector<64x96xf32> -> vector<64x96xf32>
    %14 = arith.addf %12, %13 : vector<64x96xf32>
    %15 = vector.broadcast %2 : vector<1x96xf32> to vector<64x96xf32>
    %16 = arith.addf %14, %15 : vector<64x96xf32>
    %17 = vector.shape_cast %3 : vector<1x32xf32> to vector<1x32xf32>
    %18 = vector.broadcast %17 : vector<1x32xf32> to vector<8x32xf32>
    %cst_9 = arith.constant 0.000000e+00 : f32
    %19 = vector.broadcast %cst_9 : f32 to vector<8x32xf32>
    %20 = vector.extract_strided_slice %16 {offsets = [0, 0], sizes = [8, 96], strides = [1, 1]} : vector<64x96xf32> to vector<8x96xf32>
    %cst_10 = arith.constant dense<0.000000e+00> : vector<8x96xf32>
    %21 = tpu.matmul %19, %4, %cst_10 {dimension_numbers = #tpu.dot_dimension_numbers<[1], [0], [0], [1], [0, 0, 1, 1], [], []>} : vector<8x32xf32>, vector<32x96xf32>, vector<8x96xf32> -> vector<8x96xf32>
    %22 = vector.extract_strided_slice %20 {offsets = [0, 0], sizes = [8, 64], strides = [1, 1]} : vector<8x96xf32> to vector<8x64xf32>
    %23 = vector.extract_strided_slice %21 {offsets = [0, 0], sizes = [8, 64], strides = [1, 1]} : vector<8x96xf32> to vector<8x64xf32>
    %24 = arith.addf %22, %23 : vector<8x64xf32>
    %cst_11 = arith.constant 0.000000e+00 : f32
    %25 = vector.broadcast %cst_11 : f32 to vector<8x64xf32>
    %26 = arith.subf %25, %24 : vector<8x64xf32>
    %27 = math.exp %26 : vector<8x64xf32>
    %cst_12 = arith.constant 1.000000e+00 : f32
    %28 = vector.broadcast %cst_12 : f32 to vector<8x64xf32>
    %29 = arith.addf %28, %27 : vector<8x64xf32>
    %30 = tpu.reciprocal %29 {approx = true} : vector<8x64xf32> -> vector<8x64xf32>
    %31 = vector.extract_strided_slice %30 {offsets = [0, 0], sizes = [8, 32], strides = [1, 1]} : vector<8x64xf32> to vector<8x32xf32>
    %32 = vector.extract_strided_slice %30 {offsets = [0, 32], sizes = [8, 32], strides = [1, 1]} : vector<8x64xf32> to vector<8x32xf32>
    %33 = vector.extract_strided_slice %20 {offsets = [0, 64], sizes = [8, 32], strides = [1, 1]} : vector<8x96xf32> to vector<8x32xf32>
    %34 = vector.extract_strided_slice %21 {offsets = [0, 64], sizes = [8, 32], strides = [1, 1]} : vector<8x96xf32> to vector<8x32xf32>
    %35 = arith.addf %34, %18 : vector<8x32xf32>
    %36 = arith.mulf %31, %35 : vector<8x32xf32>
    %37 = arith.addf %33, %36 : vector<8x32xf32>
    %38 = math.tanh %37 : vector<8x32xf32>
    %cst_13 = arith.constant 1.000000e+00 : f32
    %39 = vector.broadcast %cst_13 : f32 to vector<8x32xf32>
    %40 = arith.subf %39, %32 : vector<8x32xf32>
    %41 = arith.mulf %40, %38 : vector<8x32xf32>
    %42 = arith.mulf %32, %19 : vector<8x32xf32>
    %43 = arith.addf %41, %42 : vector<8x32xf32>
    %44 = vector.extract_strided_slice %16 {offsets = [8, 0], sizes = [8, 96], strides = [1, 1]} : vector<64x96xf32> to vector<8x96xf32>
    %cst_14 = arith.constant dense<0.000000e+00> : vector<8x96xf32>
    %45 = tpu.matmul %43, %4, %cst_14 {dimension_numbers = #tpu.dot_dimension_numbers<[1], [0], [0], [1], [0, 0, 1, 1], [], []>} : vector<8x32xf32>, vector<32x96xf32>, vector<8x96xf32> -> vector<8x96xf32>
    %46 = vector.extract_strided_slice %44 {offsets = [0, 0], sizes = [8, 64], strides = [1, 1]} : vector<8x96xf32> to vector<8x64xf32>
    %47 = vector.extract_strided_slice %45 {offsets = [0, 0], sizes = [8, 64], strides = [1, 1]} : vector<8x96xf32> to vector<8x64xf32>
    %48 = arith.addf %46, %47 : vector<8x64xf32>
    %cst_15 = arith.constant 0.000000e+00 : f32
    %49 = vector.broadcast %cst_15 : f32 to vector<8x64xf32>
    %50 = arith.subf %49, %48 : vector<8x64xf32>
    %51 = math.exp %50 : vector<8x64xf32>
    %cst_16 = arith.constant 1.000000e+00 : f32
    %52 = vector.broadcast %cst_16 : f32 to vector<8x64xf32>
    %53 = arith.addf %52, %51 : vector<8x64xf32>
    %54 = tpu.reciprocal %53 {approx = true} : vector<8x64xf32> -> vector<8x64xf32>
    %55 = vector.extract_strided_slice %54 {offsets = [0, 0], sizes = [8, 32], strides = [1, 1]} : vector<8x64xf32> to vector<8x32xf32>
    %56 = vector.extract_strided_slice %54 {offsets = [0, 32], sizes = [8, 32], strides = [1, 1]} : vector<8x64xf32> to vector<8x32xf32>
    %57 = vector.extract_strided_slice %44 {offsets = [0, 64], sizes = [8, 32], strides = [1, 1]} : vector<8x96xf32> to vector<8x32xf32>
    %58 = vector.extract_strided_slice %45 {offsets = [0, 64], sizes = [8, 32], strides = [1, 1]} : vector<8x96xf32> to vector<8x32xf32>
    %59 = arith.addf %58, %18 : vector<8x32xf32>
    %60 = arith.mulf %55, %59 : vector<8x32xf32>
    %61 = arith.addf %57, %60 : vector<8x32xf32>
    %62 = math.tanh %61 : vector<8x32xf32>
    %cst_17 = arith.constant 1.000000e+00 : f32
    %63 = vector.broadcast %cst_17 : f32 to vector<8x32xf32>
    %64 = arith.subf %63, %56 : vector<8x32xf32>
    %65 = arith.mulf %64, %62 : vector<8x32xf32>
    %66 = arith.mulf %56, %43 : vector<8x32xf32>
    %67 = arith.addf %65, %66 : vector<8x32xf32>
    %68 = vector.extract_strided_slice %16 {offsets = [16, 0], sizes = [8, 96], strides = [1, 1]} : vector<64x96xf32> to vector<8x96xf32>
    %cst_18 = arith.constant dense<0.000000e+00> : vector<8x96xf32>
    %69 = tpu.matmul %67, %4, %cst_18 {dimension_numbers = #tpu.dot_dimension_numbers<[1], [0], [0], [1], [0, 0, 1, 1], [], []>} : vector<8x32xf32>, vector<32x96xf32>, vector<8x96xf32> -> vector<8x96xf32>
    %70 = vector.extract_strided_slice %68 {offsets = [0, 0], sizes = [8, 64], strides = [1, 1]} : vector<8x96xf32> to vector<8x64xf32>
    %71 = vector.extract_strided_slice %69 {offsets = [0, 0], sizes = [8, 64], strides = [1, 1]} : vector<8x96xf32> to vector<8x64xf32>
    %72 = arith.addf %70, %71 : vector<8x64xf32>
    %cst_19 = arith.constant 0.000000e+00 : f32
    %73 = vector.broadcast %cst_19 : f32 to vector<8x64xf32>
    %74 = arith.subf %73, %72 : vector<8x64xf32>
    %75 = math.exp %74 : vector<8x64xf32>
    %cst_20 = arith.constant 1.000000e+00 : f32
    %76 = vector.broadcast %cst_20 : f32 to vector<8x64xf32>
    %77 = arith.addf %76, %75 : vector<8x64xf32>
    %78 = tpu.reciprocal %77 {approx = true} : vector<8x64xf32> -> vector<8x64xf32>
    %79 = vector.extract_strided_slice %78 {offsets = [0, 0], sizes = [8, 32], strides = [1, 1]} : vector<8x64xf32> to vector<8x32xf32>
    %80 = vector.extract_strided_slice %78 {offsets = [0, 32], sizes = [8, 32], strides = [1, 1]} : vector<8x64xf32> to vector<8x32xf32>
    %81 = vector.extract_strided_slice %68 {offsets = [0, 64], sizes = [8, 32], strides = [1, 1]} : vector<8x96xf32> to vector<8x32xf32>
    %82 = vector.extract_strided_slice %69 {offsets = [0, 64], sizes = [8, 32], strides = [1, 1]} : vector<8x96xf32> to vector<8x32xf32>
    %83 = arith.addf %82, %18 : vector<8x32xf32>
    %84 = arith.mulf %79, %83 : vector<8x32xf32>
    %85 = arith.addf %81, %84 : vector<8x32xf32>
    %86 = math.tanh %85 : vector<8x32xf32>
    %cst_21 = arith.constant 1.000000e+00 : f32
    %87 = vector.broadcast %cst_21 : f32 to vector<8x32xf32>
    %88 = arith.subf %87, %80 : vector<8x32xf32>
    %89 = arith.mulf %88, %86 : vector<8x32xf32>
    %90 = arith.mulf %80, %67 : vector<8x32xf32>
    %91 = arith.addf %89, %90 : vector<8x32xf32>
    %92 = vector.extract_strided_slice %16 {offsets = [24, 0], sizes = [8, 96], strides = [1, 1]} : vector<64x96xf32> to vector<8x96xf32>
    %cst_22 = arith.constant dense<0.000000e+00> : vector<8x96xf32>
    %93 = tpu.matmul %91, %4, %cst_22 {dimension_numbers = #tpu.dot_dimension_numbers<[1], [0], [0], [1], [0, 0, 1, 1], [], []>} : vector<8x32xf32>, vector<32x96xf32>, vector<8x96xf32> -> vector<8x96xf32>
    %94 = vector.extract_strided_slice %92 {offsets = [0, 0], sizes = [8, 64], strides = [1, 1]} : vector<8x96xf32> to vector<8x64xf32>
    %95 = vector.extract_strided_slice %93 {offsets = [0, 0], sizes = [8, 64], strides = [1, 1]} : vector<8x96xf32> to vector<8x64xf32>
    %96 = arith.addf %94, %95 : vector<8x64xf32>
    %cst_23 = arith.constant 0.000000e+00 : f32
    %97 = vector.broadcast %cst_23 : f32 to vector<8x64xf32>
    %98 = arith.subf %97, %96 : vector<8x64xf32>
    %99 = math.exp %98 : vector<8x64xf32>
    %cst_24 = arith.constant 1.000000e+00 : f32
    %100 = vector.broadcast %cst_24 : f32 to vector<8x64xf32>
    %101 = arith.addf %100, %99 : vector<8x64xf32>
    %102 = tpu.reciprocal %101 {approx = true} : vector<8x64xf32> -> vector<8x64xf32>
    %103 = vector.extract_strided_slice %102 {offsets = [0, 0], sizes = [8, 32], strides = [1, 1]} : vector<8x64xf32> to vector<8x32xf32>
    %104 = vector.extract_strided_slice %102 {offsets = [0, 32], sizes = [8, 32], strides = [1, 1]} : vector<8x64xf32> to vector<8x32xf32>
    %105 = vector.extract_strided_slice %92 {offsets = [0, 64], sizes = [8, 32], strides = [1, 1]} : vector<8x96xf32> to vector<8x32xf32>
    %106 = vector.extract_strided_slice %93 {offsets = [0, 64], sizes = [8, 32], strides = [1, 1]} : vector<8x96xf32> to vector<8x32xf32>
    %107 = arith.addf %106, %18 : vector<8x32xf32>
    %108 = arith.mulf %103, %107 : vector<8x32xf32>
    %109 = arith.addf %105, %108 : vector<8x32xf32>
    %110 = math.tanh %109 : vector<8x32xf32>
    %cst_25 = arith.constant 1.000000e+00 : f32
    %111 = vector.broadcast %cst_25 : f32 to vector<8x32xf32>
    %112 = arith.subf %111, %104 : vector<8x32xf32>
    %113 = arith.mulf %112, %110 : vector<8x32xf32>
    %114 = arith.mulf %104, %91 : vector<8x32xf32>
    %115 = arith.addf %113, %114 : vector<8x32xf32>
    %116 = vector.extract_strided_slice %16 {offsets = [32, 0], sizes = [8, 96], strides = [1, 1]} : vector<64x96xf32> to vector<8x96xf32>
    %cst_26 = arith.constant dense<0.000000e+00> : vector<8x96xf32>
    %117 = tpu.matmul %115, %4, %cst_26 {dimension_numbers = #tpu.dot_dimension_numbers<[1], [0], [0], [1], [0, 0, 1, 1], [], []>} : vector<8x32xf32>, vector<32x96xf32>, vector<8x96xf32> -> vector<8x96xf32>
    %118 = vector.extract_strided_slice %116 {offsets = [0, 0], sizes = [8, 64], strides = [1, 1]} : vector<8x96xf32> to vector<8x64xf32>
    %119 = vector.extract_strided_slice %117 {offsets = [0, 0], sizes = [8, 64], strides = [1, 1]} : vector<8x96xf32> to vector<8x64xf32>
    %120 = arith.addf %118, %119 : vector<8x64xf32>
    %cst_27 = arith.constant 0.000000e+00 : f32
    %121 = vector.broadcast %cst_27 : f32 to vector<8x64xf32>
    %122 = arith.subf %121, %120 : vector<8x64xf32>
    %123 = math.exp %122 : vector<8x64xf32>
    %cst_28 = arith.constant 1.000000e+00 : f32
    %124 = vector.broadcast %cst_28 : f32 to vector<8x64xf32>
    %125 = arith.addf %124, %123 : vector<8x64xf32>
    %126 = tpu.reciprocal %125 {approx = true} : vector<8x64xf32> -> vector<8x64xf32>
    %127 = vector.extract_strided_slice %126 {offsets = [0, 0], sizes = [8, 32], strides = [1, 1]} : vector<8x64xf32> to vector<8x32xf32>
    %128 = vector.extract_strided_slice %126 {offsets = [0, 32], sizes = [8, 32], strides = [1, 1]} : vector<8x64xf32> to vector<8x32xf32>
    %129 = vector.extract_strided_slice %116 {offsets = [0, 64], sizes = [8, 32], strides = [1, 1]} : vector<8x96xf32> to vector<8x32xf32>
    %130 = vector.extract_strided_slice %117 {offsets = [0, 64], sizes = [8, 32], strides = [1, 1]} : vector<8x96xf32> to vector<8x32xf32>
    %131 = arith.addf %130, %18 : vector<8x32xf32>
    %132 = arith.mulf %127, %131 : vector<8x32xf32>
    %133 = arith.addf %129, %132 : vector<8x32xf32>
    %134 = math.tanh %133 : vector<8x32xf32>
    %cst_29 = arith.constant 1.000000e+00 : f32
    %135 = vector.broadcast %cst_29 : f32 to vector<8x32xf32>
    %136 = arith.subf %135, %128 : vector<8x32xf32>
    %137 = arith.mulf %136, %134 : vector<8x32xf32>
    %138 = arith.mulf %128, %115 : vector<8x32xf32>
    %139 = arith.addf %137, %138 : vector<8x32xf32>
    %140 = vector.extract_strided_slice %16 {offsets = [40, 0], sizes = [8, 96], strides = [1, 1]} : vector<64x96xf32> to vector<8x96xf32>
    %cst_30 = arith.constant dense<0.000000e+00> : vector<8x96xf32>
    %141 = tpu.matmul %139, %4, %cst_30 {dimension_numbers = #tpu.dot_dimension_numbers<[1], [0], [0], [1], [0, 0, 1, 1], [], []>} : vector<8x32xf32>, vector<32x96xf32>, vector<8x96xf32> -> vector<8x96xf32>
    %142 = vector.extract_strided_slice %140 {offsets = [0, 0], sizes = [8, 64], strides = [1, 1]} : vector<8x96xf32> to vector<8x64xf32>
    %143 = vector.extract_strided_slice %141 {offsets = [0, 0], sizes = [8, 64], strides = [1, 1]} : vector<8x96xf32> to vector<8x64xf32>
    %144 = arith.addf %142, %143 : vector<8x64xf32>
    %cst_31 = arith.constant 0.000000e+00 : f32
    %145 = vector.broadcast %cst_31 : f32 to vector<8x64xf32>
    %146 = arith.subf %145, %144 : vector<8x64xf32>
    %147 = math.exp %146 : vector<8x64xf32>
    %cst_32 = arith.constant 1.000000e+00 : f32
    %148 = vector.broadcast %cst_32 : f32 to vector<8x64xf32>
    %149 = arith.addf %148, %147 : vector<8x64xf32>
    %150 = tpu.reciprocal %149 {approx = true} : vector<8x64xf32> -> vector<8x64xf32>
    %151 = vector.extract_strided_slice %150 {offsets = [0, 0], sizes = [8, 32], strides = [1, 1]} : vector<8x64xf32> to vector<8x32xf32>
    %152 = vector.extract_strided_slice %150 {offsets = [0, 32], sizes = [8, 32], strides = [1, 1]} : vector<8x64xf32> to vector<8x32xf32>
    %153 = vector.extract_strided_slice %140 {offsets = [0, 64], sizes = [8, 32], strides = [1, 1]} : vector<8x96xf32> to vector<8x32xf32>
    %154 = vector.extract_strided_slice %141 {offsets = [0, 64], sizes = [8, 32], strides = [1, 1]} : vector<8x96xf32> to vector<8x32xf32>
    %155 = arith.addf %154, %18 : vector<8x32xf32>
    %156 = arith.mulf %151, %155 : vector<8x32xf32>
    %157 = arith.addf %153, %156 : vector<8x32xf32>
    %158 = math.tanh %157 : vector<8x32xf32>
    %cst_33 = arith.constant 1.000000e+00 : f32
    %159 = vector.broadcast %cst_33 : f32 to vector<8x32xf32>
    %160 = arith.subf %159, %152 : vector<8x32xf32>
    %161 = arith.mulf %160, %158 : vector<8x32xf32>
    %162 = arith.mulf %152, %139 : vector<8x32xf32>
    %163 = arith.addf %161, %162 : vector<8x32xf32>
    %164 = vector.extract_strided_slice %16 {offsets = [48, 0], sizes = [8, 96], strides = [1, 1]} : vector<64x96xf32> to vector<8x96xf32>
    %cst_34 = arith.constant dense<0.000000e+00> : vector<8x96xf32>
    %165 = tpu.matmul %163, %4, %cst_34 {dimension_numbers = #tpu.dot_dimension_numbers<[1], [0], [0], [1], [0, 0, 1, 1], [], []>} : vector<8x32xf32>, vector<32x96xf32>, vector<8x96xf32> -> vector<8x96xf32>
    %166 = vector.extract_strided_slice %164 {offsets = [0, 0], sizes = [8, 64], strides = [1, 1]} : vector<8x96xf32> to vector<8x64xf32>
    %167 = vector.extract_strided_slice %165 {offsets = [0, 0], sizes = [8, 64], strides = [1, 1]} : vector<8x96xf32> to vector<8x64xf32>
    %168 = arith.addf %166, %167 : vector<8x64xf32>
    %cst_35 = arith.constant 0.000000e+00 : f32
    %169 = vector.broadcast %cst_35 : f32 to vector<8x64xf32>
    %170 = arith.subf %169, %168 : vector<8x64xf32>
    %171 = math.exp %170 : vector<8x64xf32>
    %cst_36 = arith.constant 1.000000e+00 : f32
    %172 = vector.broadcast %cst_36 : f32 to vector<8x64xf32>
    %173 = arith.addf %172, %171 : vector<8x64xf32>
    %174 = tpu.reciprocal %173 {approx = true} : vector<8x64xf32> -> vector<8x64xf32>
    %175 = vector.extract_strided_slice %174 {offsets = [0, 0], sizes = [8, 32], strides = [1, 1]} : vector<8x64xf32> to vector<8x32xf32>
    %176 = vector.extract_strided_slice %174 {offsets = [0, 32], sizes = [8, 32], strides = [1, 1]} : vector<8x64xf32> to vector<8x32xf32>
    %177 = vector.extract_strided_slice %164 {offsets = [0, 64], sizes = [8, 32], strides = [1, 1]} : vector<8x96xf32> to vector<8x32xf32>
    %178 = vector.extract_strided_slice %165 {offsets = [0, 64], sizes = [8, 32], strides = [1, 1]} : vector<8x96xf32> to vector<8x32xf32>
    %179 = arith.addf %178, %18 : vector<8x32xf32>
    %180 = arith.mulf %175, %179 : vector<8x32xf32>
    %181 = arith.addf %177, %180 : vector<8x32xf32>
    %182 = math.tanh %181 : vector<8x32xf32>
    %cst_37 = arith.constant 1.000000e+00 : f32
    %183 = vector.broadcast %cst_37 : f32 to vector<8x32xf32>
    %184 = arith.subf %183, %176 : vector<8x32xf32>
    %185 = arith.mulf %184, %182 : vector<8x32xf32>
    %186 = arith.mulf %176, %163 : vector<8x32xf32>
    %187 = arith.addf %185, %186 : vector<8x32xf32>
    %188 = vector.extract_strided_slice %16 {offsets = [56, 0], sizes = [8, 96], strides = [1, 1]} : vector<64x96xf32> to vector<8x96xf32>
    %cst_38 = arith.constant dense<0.000000e+00> : vector<8x96xf32>
    %189 = tpu.matmul %187, %4, %cst_38 {dimension_numbers = #tpu.dot_dimension_numbers<[1], [0], [0], [1], [0, 0, 1, 1], [], []>} : vector<8x32xf32>, vector<32x96xf32>, vector<8x96xf32> -> vector<8x96xf32>
    %190 = vector.extract_strided_slice %188 {offsets = [0, 0], sizes = [8, 64], strides = [1, 1]} : vector<8x96xf32> to vector<8x64xf32>
    %191 = vector.extract_strided_slice %189 {offsets = [0, 0], sizes = [8, 64], strides = [1, 1]} : vector<8x96xf32> to vector<8x64xf32>
    %192 = arith.addf %190, %191 : vector<8x64xf32>
    %cst_39 = arith.constant 0.000000e+00 : f32
    %193 = vector.broadcast %cst_39 : f32 to vector<8x64xf32>
    %194 = arith.subf %193, %192 : vector<8x64xf32>
    %195 = math.exp %194 : vector<8x64xf32>
    %cst_40 = arith.constant 1.000000e+00 : f32
    %196 = vector.broadcast %cst_40 : f32 to vector<8x64xf32>
    %197 = arith.addf %196, %195 : vector<8x64xf32>
    %198 = tpu.reciprocal %197 {approx = true} : vector<8x64xf32> -> vector<8x64xf32>
    %199 = vector.extract_strided_slice %198 {offsets = [0, 0], sizes = [8, 32], strides = [1, 1]} : vector<8x64xf32> to vector<8x32xf32>
    %200 = vector.extract_strided_slice %198 {offsets = [0, 32], sizes = [8, 32], strides = [1, 1]} : vector<8x64xf32> to vector<8x32xf32>
    %201 = vector.extract_strided_slice %188 {offsets = [0, 64], sizes = [8, 32], strides = [1, 1]} : vector<8x96xf32> to vector<8x32xf32>
    %202 = vector.extract_strided_slice %189 {offsets = [0, 64], sizes = [8, 32], strides = [1, 1]} : vector<8x96xf32> to vector<8x32xf32>
    %203 = arith.addf %202, %18 : vector<8x32xf32>
    %204 = arith.mulf %199, %203 : vector<8x32xf32>
    %205 = arith.addf %201, %204 : vector<8x32xf32>
    %206 = math.tanh %205 : vector<8x32xf32>
    %cst_41 = arith.constant 1.000000e+00 : f32
    %207 = vector.broadcast %cst_41 : f32 to vector<8x32xf32>
    %208 = arith.subf %207, %200 : vector<8x32xf32>
    %209 = arith.mulf %208, %206 : vector<8x32xf32>
    %210 = arith.mulf %200, %187 : vector<8x32xf32>
    %211 = arith.addf %209, %210 : vector<8x32xf32>
    %c0_42 = arith.constant 0 : index
    %c0_43 = arith.constant 0 : index
    %212 = vector.load %arg5[%c0_42, %c0_43] : memref<43x128xf32, #tpu.memory_space<vmem>>, vector<32x128xf32>
    %c32 = arith.constant 32 : index
    %c0_44 = arith.constant 0 : index
    %213 = vector.load %arg5[%c32, %c0_44] : memref<43x128xf32, #tpu.memory_space<vmem>>, vector<6x128xf32>
    %c40 = arith.constant 40 : index
    %c0_45 = arith.constant 0 : index
    %214 = vector.load %arg5[%c40, %c0_45] : memref<43x128xf32, #tpu.memory_space<vmem>>, vector<1x128xf32>
    %c41 = arith.constant 41 : index
    %c0_46 = arith.constant 0 : index
    %215 = vector.load %arg5[%c41, %c0_46] : memref<43x128xf32, #tpu.memory_space<vmem>>, vector<1x128xf32>
    %c42 = arith.constant 42 : index
    %c0_47 = arith.constant 0 : index
    %216 = vector.load %arg5[%c42, %c0_47] : memref<43x128xf32, #tpu.memory_space<vmem>>, vector<1x1xf32>
    %cst_48 = arith.constant dense<0.000000e+00> : vector<8x128xf32>
    %217 = tpu.matmul %211, %212, %cst_48 {dimension_numbers = #tpu.dot_dimension_numbers<[1], [0], [0], [1], [0, 0, 1, 1], [], []>} : vector<8x32xf32>, vector<32x128xf32>, vector<8x128xf32> -> vector<8x128xf32>
    %c0_49 = arith.constant 0 : index
    %c0_50 = arith.constant 0 : index
    %218 = vector.load %arg3[%c0_49, %c0_50] : memref<8x6xf32, #tpu.memory_space<vmem>>, vector<8x6xf32>
    %cst_51 = arith.constant dense<0.000000e+00> : vector<8x128xf32>
    %219 = tpu.matmul %218, %213, %cst_51 {dimension_numbers = #tpu.dot_dimension_numbers<[1], [0], [0], [1], [0, 0, 1, 1], [], []>} : vector<8x6xf32>, vector<6x128xf32>, vector<8x128xf32> -> vector<8x128xf32>
    %220 = arith.addf %217, %219 : vector<8x128xf32>
    %221 = vector.broadcast %214 : vector<1x128xf32> to vector<8x128xf32>
    %222 = arith.addf %220, %221 : vector<8x128xf32>
    %cst_52 = arith.constant 0.000000e+00 : f32
    %223 = vector.broadcast %cst_52 : f32 to vector<8x128xf32>
    %224 = arith.maximumf %222, %223 : vector<8x128xf32>
    %225 = vector.broadcast %215 : vector<1x128xf32> to vector<8x128xf32>
    %226 = arith.mulf %224, %225 : vector<8x128xf32>
    %cst_53 = arith.constant dense<0.000000e+00> : vector<8xf32>
    %227 = vector.multi_reduction <add>, %226, %cst_53 [1] : vector<8x128xf32> to vector<8xf32>
    %228 = vector.shape_cast %227 : vector<8xf32> to vector<8x1xf32>
    %229 = vector.broadcast %216 : vector<1x1xf32> to vector<8x1xf32>
    %230 = arith.addf %228, %229 : vector<8x1xf32>
    %cst_54 = arith.constant 0.000000e+00 : f32
    %231 = vector.broadcast %cst_54 : f32 to vector<8x1xf32>
    %232 = arith.subf %231, %230 : vector<8x1xf32>
    %233 = math.exp %232 : vector<8x1xf32>
    %cst_55 = arith.constant 1.000000e+00 : f32
    %234 = vector.broadcast %cst_55 : f32 to vector<8x1xf32>
    %235 = arith.addf %234, %233 : vector<8x1xf32>
    %cst_56 = arith.constant 1.000000e+00 : f32
    %236 = vector.broadcast %cst_56 : f32 to vector<8x1xf32>
    %237 = arith.divf %236, %235 : vector<8x1xf32>
    %c0_57 = arith.constant 0 : index
    %c0_58 = arith.constant 0 : index
    %238 = vector.load %arg6[%c0_57, %c0_58] : memref<8x1xf32, #tpu.memory_space<vmem>>, vector<8x1xf32>
    tpu.vector_store %arg6[%c0_57, %c0_58], %237 {strides = array<i32>} : memref<8x1xf32, #tpu.memory_space<vmem>>, vector<8x1xf32>,
    return
  }
  func.func @transform_0(%arg0: i32) -> (i32, i32) {
    %c0_i32 = arith.constant 0 : i32
    %c0_i32_0 = arith.constant 0 : i32
    %c0_i32_1 = arith.constant 0 : i32
    return %c0_i32, %c0_i32_0 : i32, i32
  }
  func.func @transform_1(%arg0: i32) -> (i32, i32) {
    %c0_i32 = arith.constant 0 : i32
    %c0_i32_0 = arith.constant 0 : i32
    %c0_i32_1 = arith.constant 0 : i32
    return %c0_i32, %c0_i32_0 : i32, i32
  }
  func.func @transform_2(%arg0: i32) -> (i32, i32) {
    %c0_i32 = arith.constant 0 : i32
    %c0_i32_0 = arith.constant 0 : i32
    %c0_i32_1 = arith.constant 0 : i32
    return %c0_i32, %c0_i32_0 : i32, i32
  }
  func.func @transform_3(%arg0: i32) -> (i32, i32) {
    %c0_i32 = arith.constant 0 : i32
    %c0_i32_0 = arith.constant 0 : i32
    %c0_i32_1 = arith.constant 0 : i32
    return %c0_i32, %c0_i32_0 : i32, i32
  }
  func.func @transform_4(%arg0: i32) -> (i32, i32) {
    %c0_i32 = arith.constant 0 : i32
    %c0_i32_0 = arith.constant 0 : i32
    %c0_i32_1 = arith.constant 0 : i32
    return %c0_i32, %c0_i32_0 : i32, i32
  }
  func.func @transform_5(%arg0: i32) -> (i32, i32) {
    %c0_i32 = arith.constant 0 : i32
    %c0_i32_0 = arith.constant 0 : i32
    %c0_i32_1 = arith.constant 0 : i32
    return %c0_i32, %c0_i32_0 : i32, i32
  }
}

</mosaic_0001>

<bundles_post_ra>
// kernel: gru_model_forward.1
= control target key start
LH: loop header
LB: loop body
LE: loop exit
PB: predicated region body
PF: predicated region fallthrough
CT: control target
= control target key end

     0   :  { %vm196_vm0 = vcmask 1040384   ;;  %v868_v0 = vmov 0   ;;  %vm126_vm1 = vcmask 1041408   ;;  %vm171_vm2 = vcmask 72704   ;;  %s870_s14 = smov 64   ;;  %s1169_s0 = inlined_call_operand.vmem [shape: s32[64,1], index: 0, kind: input, shape index: {}]   ;;  %s1170_s3 = inlined_call_operand.vmem [shape: f32[120,96], index: 3, kind: input, shape index: {}]   ;;  %s1171_s1 = inlined_call_operand.vmem [shape: f32[64,9], index: 1, kind: input, shape index: {}]   ;;  %s1172_s4 = inlined_call_operand.vmem [shape: f32[43,128], index: 4, kind: input, shape index: {}]   ;;  %s1173_s2 = inlined_call_operand.vmem [shape: f32[8,6], index: 2, kind: input, shape index: {}]   ;;  %s1174_s5 = inlined_call_operand.vmem [shape: f32[8,1], index: 5, kind: output, shape index: {}]  }
   0x1   :  { %808 = vset.pattern.permute.xlu0 %v868_v0  ;;  %v41_v1 = vld [vmem:[%s1169_s0 + $0x30] sm:$0xff]  ;;  %v21_v2 = vld [vmem:[%s1170_s3 + $0x8] sm:$0x1]  ;;  %810 = vset.pattern.permute.xlu1 %v868_v0  ;;  %v20_v3 = vld [vmem:[%s1170_s3] sm:$0xff]  ;;  %v43_v23 = vlaneseq  ;;  %vm101_vm3 = vcmask 408576   ;;  %v869_v26 = vmov 0.0  }
   0x2   :  { %64 = vperm.xlu0 %808, %v41_v1   ;;  %771 = vmatpush.msk.msra.mxu1 %vm196_vm0, %v21_v2  ;;  %v93_v4 = vld [vmem:[%s1171_s1] sm:$0xff]  ;;  %v27_v6 = vld [vmem:[%s1170_s3 + $0x38] sm:$0xff]  ;;  %v26_v7 = vld [vmem:[%s1170_s3 + $0x30] sm:$0xff]  ;;  %vm251_vm8 = vcmask 261120   ;;  %vm671_vm13 = vcmask 1045504   ;;  %vm667_vm14 = vcmask 48128  }
   0x3   :  { %v28_v5 = vld [vmem:[%s1170_s3 + $0x40] sm:$0x3]  ;;  %809 = vset.pattern.permute.xlu2 %v868_v0  ;;  %v25_v9 = vld [vmem:[%s1170_s3 + $0x28] sm:$0xff]  ;;  %v23_v12 = vld [vmem:[%s1170_s3 + $0x18] sm:$0xff]  ;;  %v994_v24 = vand.u32 127, %v43_v23 }
   0x4   :  { %215 = vmatpush.msra.mxu1 %v20_v3  ;;  %790 = vmatpush.msk.msra.mxu2 %vm126_vm1, %v28_v5  ;;  %v35_v8 = vld [vmem:[%s1169_s0] sm:$0xff]  ;;  %v94_v11 = vld [vmem:[%s1171_s1 + $0x8] sm:$0xff]  ;;  %v95_v13 = vld [vmem:[%s1171_s1 + $0x10] sm:$0xff] }
   0x5   :  { %772 = vmatmul.msk.f32.vlgmr.msra.gmra.mxu1 %vm171_vm2, %v93_v4  ;;  %762 = vmatpush.msk.msra.mxu0 %vm126_vm1, %v28_v5  ;;  %v24_v10 = vld [vmem:[%s1170_s3 + $0x20] sm:$0xff]  ;;  %v96_v14 = vld [vmem:[%s1171_s1 + $0x18] sm:$0xff]  ;;  %v98_v16 = vld [vmem:[%s1171_s1 + $0x28] sm:$0xff] }
   0x6   :  { %792 = vmatpush.msra.mxu2 %v27_v6  ;;  %791 = vmatpush.msk.msra.mxu3 %vm126_vm1, %v28_v5  ;;  %v97_v15 = vld [vmem:[%s1171_s1 + $0x20] sm:$0xff]  ;;  %v22_v17 = vld [vmem:[%s1170_s3 + $0x10] sm:$0xff]  ;;  %v970_v19 = vld [vmem:[%s1170_s3 + $0x68] sm:$0xff]  ;;  %vm748_vm1 = vcmask 7168  }
   0x7   :  { %140 = vmatpush.msra.mxu0 %v27_v6  ;;  %v965_v18 = vld [vmem:[%s1170_s3 + $0x70] sm:$0xff]  ;;  %v977_v20 = vld [vmem:[%s1170_s3 + $0x60] sm:$0xff]  ;;  %v990_v22 = vld [vmem:[%s1170_s3 + $0x58] sm:$0xff] }
   0x8   :  { %794 = vmatpush.msra.mxu2 %v26_v7  ;;  %793 = vmatpush.msra.mxu3 %v27_v6  ;;  %v99_v21 = vld [vmem:[%s1171_s1 + $0x30] sm:$0xff]  ;;  %v1023_v37 = vld [vmem:[%s1170_s3 + $0x48] ss:$0 sm:$0xff]  ;;  %v42_v51 = vld [vmem:[%s1169_s0 + $0x38] sm:$0xff] }
   0x9   :  { %141 = vmatpush.msra.mxu0 %v26_v7  ;;  %v1016_v31 = vld [vmem:[%s1170_s3 + $0x50] ss:$0 sm:$0xff]  ;;  %s871_s3 = smov 96   ;;  %v36_v50 = vld [vmem:[%s1169_s0 + $0x8] sm:$0xff]  ;;  %v100_v57 = vld [vmem:[%s1171_s1 + $0x38] sm:$0xff] }
   0xa   :  { %46 = vperm.xlu0 %808, %v35_v8   ;;  %796 = vmatpush.msra.mxu2 %v25_v9 }
   0xb   :  { %142 = vmatpush.msra.mxu0 %v25_v9  ;;  %795 = vmatpush.msra.mxu3 %v26_v7 }
   0xc   :  { %798 = vmatpush.msra.mxu2 %v24_v10 }
   0xd   :  { %773 = vmatmul.msk.f32.gmra.mxu1 %vm171_vm2, %v94_v11  ;;  %143 = vmatpush.msra.mxu0 %v24_v10 }
   0xe   :  { %800 = vmatpush.msra.mxu2 %v23_v12  ;;  %797 = vmatpush.msra.mxu3 %v25_v9 }
   0xf   :  { %144 = vmatpush.msra.mxu0 %v23_v12 }
  0x10   :  { %799 = vmatpush.msra.mxu3 %v24_v10  ;;  %802 = vmatpush.msra.mxu2 %v22_v17 }
  0x11   :  { %145 = vmatpush.msra.mxu0 %v22_v17 }
  0x12   :  { %801 = vmatpush.msra.mxu3 %v23_v12  ;;  %267 = vmatpush.msrb.mxu2 %v965_v18 }
  0x14   :  { %803 = vmatpush.msra.mxu3 %v22_v17  ;;  %268 = vmatpush.msrb.mxu2 %v970_v19 }
  0x15   :  { %774 = vmatmul.msk.f32.gmra.mxu1 %vm171_vm2, %v95_v13 }
  0x16   :  { %318 = vmatpush.msrb.mxu3 %v965_v18  ;;  %269 = vmatpush.msrb.mxu2 %v977_v20 }
  0x18   :  { %319 = vmatpush.msrb.mxu3 %v970_v19  ;;  %270 = vmatpush.msrb.mxu2 %v990_v22 }
  0x1a   :  { %320 = vmatpush.msrb.mxu3 %v977_v20 }
  0x1c   :  { %321 = vmatpush.msrb.mxu3 %v990_v22 }
  0x1d   :  { %775 = vmatmul.msk.f32.gmra.mxu1 %vm171_vm2, %v96_v14  ;;  %v37_v14 = vld [vmem:[%s1169_s0 + $0x10] sm:$0xff] }
  0x25   :  { %776 = vmatmul.msk.f32.gmra.mxu1 %vm171_vm2, %v97_v15 }
  0x2d   :  { %777 = vmatmul.msk.f32.gmra.mxu1 %vm171_vm2, %v98_v16 }
  0x35   :  { %778 = vmatmul.msk.f32.gmra.mxu1 %vm171_vm2, %v99_v21 }
  0x3d   :  { %779 = vmatmul.msk.f32.gmra.mxu1 %vm171_vm2, %v100_v57 }
  0x74   :  { %v65_v25 = vpop.permute.xlu0 %64 }
  0x75   :  { %vm75_vm4 = vcmp.eq.s32.totalorder %v994_v24, %v65_v25 }
  0x76   :  { %v760_v27 = vsel %vm75_vm4, 1.0, %v869_v26 }
  0x77   :  { %769 = vmatmul.msk.f32.vlgmr.msra.gmra.mxu2 %vm101_vm3, %v760_v27 }
  0x78   :  { %369 = vmatpush.msra.mxu2 %v965_v18 }
  0x7a   :  { %370 = vmatpush.msra.mxu2 %v970_v19 }
  0x7c   :  { %v47_v28 = vpop.permute.xlu0 %46  ;;  %371 = vmatpush.msra.mxu2 %v977_v20 }
  0x7d   :  { %vm69_vm5 = vcmp.eq.s32.totalorder %v994_v24, %v47_v28 }
  0x7e   :  { %v754_v29 = vsel %vm69_vm5, 1.0, %v869_v26  ;;  %372 = vmatpush.msra.mxu2 %v990_v22 }
  0x7f   :  { %763 = vmatmul.msk.f32.vlgmr.msra.gmra.mxu0 %vm101_vm3, %v754_v29  ;;  %271 = vmatmul.f32.vlgmr.msrb.gmra.mxu2 %v869_v26 }
  0x80   :  { %471 = vmatpush.msrb.mxu2 %v965_v18 }
  0x82   :  { %472 = vmatpush.msrb.mxu2 %v970_v19  ;;  %v217_v35 = vpop.f32.mrf.mxu1 }
  0x84   :  { %473 = vmatpush.msrb.mxu2 %v977_v20 }
  0x86   :  { %474 = vmatpush.msrb.mxu2 %v990_v22 }
  0x8a   :  { %v220_v3 = vpop.f32.mrf.mxu1 }
  0xfa   :  { %v1011_v30 = vpop.f32.mrf.mxu2 }
  0xfc   :  { %v147_v34 = vpop.f32.mrf.mxu0 }
  0xfd   :  { %v218_v36 = vadd.f32 %v217_v35, %v147_v34 }
  0xff   :  { %v242_v38 = vadd.f32 %v1023_v37, %v218_v36 }
 0x102   :  { %v272_v32 = vpop.f32.mrf.mxu2 }
 0x103   :  { %v281_v33 = vadd.f32 %v1016_v31, %v272_v32  ;;  %v275_v39 = vadd.f32 %v272_v32, %v242_v38 }
 0x105   :  { %283 = vrot.lane.b32.xlu1 %v281_v33, %s870_s14  ;;  %v276_v40 = vsub.f32 0.0, %v275_v39 }
 0x107   :  { %v277_v41 = vmul.f32 1.442695, %v276_v40 }
 0x109   :  { %816 = vpow2.f32 %v277_v41 }
 0x10f   :  { %v817_v42 = vpop.eup %816 }
 0x110   :  { %v279_v43 = vadd.f32 1.0, %v817_v42 }
 0x112   :  { %818 = vrcp.f32 %v279_v43 }
 0x118   :  { %v819_v44 = vpop.eup %818 }
 0x119   :  { %v293_v52 = vsub.f32 1.0, %v819_v44  ;;  %v299_v54 = vmul.f32 0.0, %v819_v44 }
 0x177   :  { %v284_v45 = vpop.permute.xlu1 %283 }
 0x178   :  { %v286_v46 = vmul.f32 %v819_v44, %v284_v45 }
 0x17a   :  { %288 = vrot.lane.b32.xlu1 %v286_v46, %s870_s14 }
 0x182   :  { %49 = vperm.xlu1 %810, %v36_v50  }
 0x1ec   :  { %v289_v47 = vpop.permute.xlu1 %288 }
 0x1ed   :  { %v291_v48 = vadd.f32 %v289_v47, %v242_v38  ;;  %v223_v38 = vpop.f32.mrf.mxu1 }
 0x1ef   :  { %820 = vtanh.f32 %v291_v48 }
 0x1f4   :  { %v50_v60 = vpop.permute.xlu1 %49 }
 0x1f5   :  { %v821_v49 = vpop.eup %820  ;;  %vm70_vm7 = vcmp.eq.s32.totalorder %v994_v24, %v50_v60 }
 0x1f6   :  { %295 = vrot.lane.b32.xlu2 %v821_v49, %s871_s3  ;;  %v755_v61 = vsel %vm70_vm7, 1.0, %v869_v26  ;;  %v38_v49 = vld [vmem:[%s1169_s0 + $0x18] sm:$0xff] }
 0x1f7   :  { %764 = vmatmul.msk.f32.gmra.mxu0 %vm101_vm3, %v755_v61 }
 0x1fe   :  { %67 = vperm.xlu2 %809, %v42_v51  }
 0x250   :  { %v296_v53 = vpop.permute.xlu2 %295 }
 0x251   :  { %v298_v55 = vmul.f32 %v296_v53, %v293_v52 }
 0x253   :  { %v300_v56 = vadd.f32 %v299_v54, %v298_v55 }
 0x255   :  { %302 = vrot.lane.b32.xlu0 %v300_v56, %s871_s3 }
 0x258   :  { %v68_v58 = vpop.permute.xlu2 %67 }
 0x259   :  { %vm76_vm6 = vcmp.eq.s32.totalorder %v994_v24, %v68_v58 }
 0x25a   :  { %v761_v59 = vsel %vm76_vm6, 1.0, %v869_v26 }
 0x25b   :  { %770 = vmatmul.msk.f32.vlgmr.msra.gmra.mxu3 %vm101_vm3, %v761_v59 }
 0x25c   :  { %420 = vmatpush.msra.mxu3 %v965_v18 }
 0x25e   :  { %421 = vmatpush.msra.mxu3 %v970_v19 }
 0x260   :  { %422 = vmatpush.msra.mxu3 %v977_v20 }
 0x262   :  { %423 = vmatpush.msra.mxu3 %v990_v22 }
 0x274   :  { %v150_v2 = vpop.f32.mrf.mxu0 }
 0x275   :  { %v221_v4 = vadd.f32 %v220_v3, %v150_v2 }
 0x277   :  { %v243_v5 = vadd.f32 %v1023_v37, %v221_v4 }
 0x2c7   :  { %v303_v62 = vpop.permute.xlu0 %302 }
 0x2c8   :  { %780 = vmatmul.msk.f32.vlgmr.msrb.gmra.mxu3 %vm251_vm8, %v303_v62 }
 0x2c9   :  { %522 = vmatpush.msrb.mxu3 %v965_v18 }
 0x2cb   :  { %523 = vmatpush.msrb.mxu3 %v970_v19 }
 0x2cd   :  { %524 = vmatpush.msrb.mxu3 %v977_v20 }
 0x2cf   :  { %525 = vmatpush.msrb.mxu3 %v990_v22 }
 0x2de   :  { %v1054_v63 = vpop.f32.mrf.mxu3 }
 0x34b   :  { %v323_v0 = vpop.f32.mrf.mxu3 }
 0x34c   :  { %v332_v1 = vadd.f32 %v1016_v31, %v323_v0  ;;  %v326_v6 = vadd.f32 %v323_v0, %v243_v5 }
 0x34e   :  { %334 = vrot.lane.b32.xlu2 %v332_v1, %s870_s14  ;;  %v327_v7 = vsub.f32 0.0, %v326_v6  ;;  %v226_v1 = vpop.f32.mrf.mxu1 }
 0x350   :  { %v328_v8 = vmul.f32 1.442695, %v327_v7 }
 0x352   :  { %822 = vpow2.f32 %v328_v8  ;;  %v39_v8 = vld [vmem:[%s1169_s0 + $0x20] sm:$0xff] }
 0x358   :  { %v823_v9 = vpop.eup %822 }
 0x359   :  { %v330_v10 = vadd.f32 1.0, %v823_v9 }
 0x35b   :  { %824 = vrcp.f32 %v330_v10 }
 0x361   :  { %v825_v11 = vpop.eup %824 }
 0x362   :  { %v344_v25 = vsub.f32 1.0, %v825_v11  ;;  %v350_v28 = vmul.f32 %v825_v11, %v300_v56 }
 0x3a8   :  { %v335_v12 = vpop.permute.xlu2 %334 }
 0x3a9   :  { %v337_v13 = vmul.f32 %v825_v11, %v335_v12 }
 0x3ab   :  { %339 = vrot.lane.b32.xlu0 %v337_v13, %s870_s14 }
 0x3b3   :  { %52 = vperm.xlu0 %808, %v37_v14  }
 0x41d   :  { %v340_v15 = vpop.permute.xlu0 %339 }
 0x41e   :  { %v342_v16 = vadd.f32 %v340_v15, %v243_v5 }
 0x420   :  { %826 = vtanh.f32 %v342_v16 }
 0x425   :  { %v53_v17 = vpop.permute.xlu0 %52 }
 0x426   :  { %v827_v21 = vpop.eup %826  ;;  %vm71_vm9 = vcmp.eq.s32.totalorder %v994_v24, %v53_v17 }
 0x427   :  { %v756_v23 = vsel %vm71_vm9, 1.0, %v869_v26  ;;  %346 = vrot.lane.b32.xlu1 %v827_v21, %s871_s3 }
 0x428   :  { %765 = vmatmul.msk.f32.gmra.mxu0 %vm101_vm3, %v756_v23 }
 0x499   :  { %v347_v27 = vpop.permute.xlu1 %346 }
 0x49a   :  { %v349_v29 = vmul.f32 %v347_v27, %v344_v25 }
 0x49c   :  { %v351_v32 = vadd.f32 %v350_v28, %v349_v29  ;;  %v229_v29 = vpop.f32.mrf.mxu1 }
 0x49e   :  { %353 = vrot.lane.b32.xlu2 %v351_v32, %s871_s3 }
 0x4a5   :  { %v153_v36 = vpop.f32.mrf.mxu0 }
 0x4a6   :  { %v224_v39 = vadd.f32 %v223_v38, %v153_v36 }
 0x4a8   :  { %v244_v40 = vadd.f32 %v1023_v37, %v224_v39 }
 0x4f8   :  { %v354_v33 = vpop.permute.xlu2 %353 }
 0x4f9   :  { %781 = vmatmul.msk.f32.vlgmr.msra.gmra.mxu2 %vm251_vm8, %v354_v33 }
 0x4fa   :  { %573 = vmatpush.msra.mxu2 %v965_v18 }
 0x4fc   :  { %574 = vmatpush.msra.mxu2 %v970_v19 }
 0x4fe   :  { %575 = vmatpush.msra.mxu2 %v977_v20 }
 0x500   :  { %576 = vmatpush.msra.mxu2 %v990_v22 }
 0x57c   :  { %v374_v34 = vpop.f32.mrf.mxu2 }
 0x57d   :  { %v383_v35 = vadd.f32 %v1016_v31, %v374_v34  ;;  %v377_v41 = vadd.f32 %v374_v34, %v244_v40 }
 0x57f   :  { %385 = vrot.lane.b32.xlu1 %v383_v35, %s870_s14  ;;  %v378_v42 = vsub.f32 0.0, %v377_v41 }
 0x581   :  { %v379_v43 = vmul.f32 1.442695, %v378_v42 }
 0x583   :  { %828 = vpow2.f32 %v379_v43  ;;  %v40_v43 = vld [vmem:[%s1169_s0 + $0x28] sm:$0xff] }
 0x589   :  { %v829_v44 = vpop.eup %828 }
 0x58a   :  { %v381_v45 = vadd.f32 1.0, %v829_v44 }
 0x58c   :  { %830 = vrcp.f32 %v381_v45 }
 0x592   :  { %v831_v46 = vpop.eup %830 }
 0x593   :  { %v395_v55 = vsub.f32 1.0, %v831_v46  ;;  %v401_v57 = vmul.f32 %v831_v46, %v351_v32 }
 0x5f1   :  { %v386_v47 = vpop.permute.xlu1 %385 }
 0x5f2   :  { %v388_v48 = vmul.f32 %v831_v46, %v386_v47 }
 0x5f4   :  { %390 = vrot.lane.b32.xlu2 %v388_v48, %s870_s14 }
 0x5fc   :  { %55 = vperm.xlu2 %809, %v38_v49  }
 0x64e   :  { %v391_v50 = vpop.permute.xlu2 %390 }
 0x64f   :  { %v393_v51 = vadd.f32 %v391_v50, %v244_v40 }
 0x651   :  { %832 = vtanh.f32 %v393_v51 }
 0x656   :  { %v56_v52 = vpop.permute.xlu2 %55 }
 0x657   :  { %v833_v53 = vpop.eup %832  ;;  %vm72_vm10 = vcmp.eq.s32.totalorder %v994_v24, %v56_v52 }
 0x658   :  { %v757_v54 = vsel %vm72_vm10, 1.0, %v869_v26  ;;  %397 = vrot.lane.b32.xlu0 %v833_v53, %s871_s3 }
 0x659   :  { %766 = vmatmul.msk.f32.gmra.mxu0 %vm101_vm3, %v757_v54 }
 0x6ca   :  { %v398_v56 = vpop.permute.xlu0 %397 }
 0x6cb   :  { %v400_v58 = vmul.f32 %v398_v56, %v395_v55 }
 0x6cd   :  { %v402_v59 = vadd.f32 %v401_v57, %v400_v58 }
 0x6cf   :  { %404 = vrot.lane.b32.xlu1 %v402_v59, %s871_s3 }
 0x6d6   :  { %v156_v0 = vpop.f32.mrf.mxu0 }
 0x6d7   :  { %v227_v2 = vadd.f32 %v226_v1, %v156_v0 }
 0x6d9   :  { %v245_v3 = vadd.f32 %v1023_v37, %v227_v2 }
 0x741   :  { %v405_v60 = vpop.permute.xlu1 %404 }
 0x742   :  { %782 = vmatmul.msk.f32.vlgmr.msra.gmra.mxu3 %vm251_vm8, %v405_v60 }
 0x743   :  { %624 = vmatpush.msra.mxu3 %v965_v18 }
 0x745   :  { %625 = vmatpush.msra.mxu3 %v970_v19 }
 0x747   :  { %626 = vmatpush.msra.mxu3 %v977_v20 }
 0x749   :  { %627 = vmatpush.msra.mxu3 %v990_v22 }
 0x7c5   :  { %v425_v61 = vpop.f32.mrf.mxu3 }
 0x7c6   :  { %v434_v62 = vadd.f32 %v1016_v31, %v425_v61  ;;  %v428_v4 = vadd.f32 %v425_v61, %v245_v3 }
 0x7c8   :  { %436 = vrot.lane.b32.xlu0 %v434_v62, %s870_s14  ;;  %v429_v5 = vsub.f32 0.0, %v428_v4 }
 0x7ca   :  { %v430_v6 = vmul.f32 1.442695, %v429_v5 }
 0x7cc   :  { %834 = vpow2.f32 %v430_v6 }
 0x7d2   :  { %v835_v18 = vpop.eup %834 }
 0x7d3   :  { %v432_v19 = vadd.f32 1.0, %v835_v18 }
 0x7d5   :  { %836 = vrcp.f32 %v432_v19 }
 0x7db   :  { %v837_v20 = vpop.eup %836 }
 0x7dc   :  { %v446_v14 = vsub.f32 1.0, %v837_v20  ;;  %v452_v16 = vmul.f32 %v837_v20, %v402_v59 }
 0x83a   :  { %v437_v7 = vpop.permute.xlu0 %436 }
 0x83b   :  { %v439_v22 = vmul.f32 %v837_v20, %v437_v7 }
 0x83d   :  { %441 = vrot.lane.b32.xlu1 %v439_v22, %s870_s14 }
 0x845   :  { %58 = vperm.xlu1 %810, %v39_v8  }
 0x8af   :  { %v442_v9 = vpop.permute.xlu1 %441 }
 0x8b0   :  { %v444_v10 = vadd.f32 %v442_v9, %v245_v3 }
 0x8b2   :  { %838 = vtanh.f32 %v444_v10 }
 0x8b7   :  { %v59_v11 = vpop.permute.xlu1 %58 }
 0x8b8   :  { %v839_v12 = vpop.eup %838  ;;  %vm73_vm11 = vcmp.eq.s32.totalorder %v994_v24, %v59_v11 }
 0x8b9   :  { %v758_v13 = vsel %vm73_vm11, 1.0, %v869_v26  ;;  %448 = vrot.lane.b32.xlu2 %v839_v12, %s871_s3 }
 0x8ba   :  { %767 = vmatmul.msk.f32.gmra.mxu0 %vm101_vm3, %v758_v13 }
 0x913   :  { %v449_v15 = vpop.permute.xlu2 %448 }
 0x914   :  { %v451_v17 = vmul.f32 %v449_v15, %v446_v14 }
 0x916   :  { %v453_v21 = vadd.f32 %v452_v16, %v451_v17 }
 0x918   :  { %455 = vrot.lane.b32.xlu0 %v453_v21, %s871_s3 }
 0x937   :  { %v159_v28 = vpop.f32.mrf.mxu0 }
 0x938   :  { %v230_v32 = vadd.f32 %v229_v29, %v159_v28 }
 0x93a   :  { %v246_v33 = vadd.f32 %v1023_v37, %v230_v32 }
 0x98a   :  { %v456_v23 = vpop.permute.xlu0 %455 }
 0x98b   :  { %783 = vmatmul.msk.f32.vlgmr.msrb.gmra.mxu2 %vm251_vm8, %v456_v23 }
 0xa0e   :  { %v476_v25 = vpop.f32.mrf.mxu2 }
 0xa0f   :  { %v485_v27 = vadd.f32 %v1016_v31, %v476_v25  ;;  %v479_v34 = vadd.f32 %v476_v25, %v246_v33 }
 0xa11   :  { %487 = vrot.lane.b32.xlu2 %v485_v27, %s870_s14  ;;  %v480_v35 = vsub.f32 0.0, %v479_v34 }
 0xa13   :  { %v481_v36 = vmul.f32 1.442695, %v480_v35 }
 0xa15   :  { %840 = vpow2.f32 %v481_v36 }
 0xa1b   :  { %v841_v38 = vpop.eup %840 }
 0xa1c   :  { %v483_v39 = vadd.f32 1.0, %v841_v38 }
 0xa1e   :  { %842 = vrcp.f32 %v483_v39 }
 0xa24   :  { %v843_v40 = vpop.eup %842 }
 0xa25   :  { %v497_v49 = vsub.f32 1.0, %v843_v40  ;;  %v503_v51 = vmul.f32 %v843_v40, %v453_v21 }
 0xa6b   :  { %v488_v41 = vpop.permute.xlu2 %487 }
 0xa6c   :  { %v490_v42 = vmul.f32 %v843_v40, %v488_v41 }
 0xa6e   :  { %492 = vrot.lane.b32.xlu0 %v490_v42, %s870_s14 }
 0xa76   :  { %61 = vperm.xlu0 %808, %v40_v43  }
 0xae0   :  { %v493_v44 = vpop.permute.xlu0 %492 }
 0xae1   :  { %v495_v45 = vadd.f32 %v493_v44, %v246_v33 }
 0xae3   :  { %844 = vtanh.f32 %v495_v45 }
 0xae8   :  { %v62_v46 = vpop.permute.xlu0 %61 }
 0xae9   :  { %v845_v47 = vpop.eup %844  ;;  %vm74_vm12 = vcmp.eq.s32.totalorder %v994_v24, %v62_v46 }
 0xaea   :  { %v759_v48 = vsel %vm74_vm12, 1.0, %v869_v26  ;;  %499 = vrot.lane.b32.xlu1 %v845_v47, %s871_s3  ;;  %v232_v26 = vpop.f32.mrf.mxu1 }
 0xaeb   :  { %768 = vmatmul.msk.f32.gmra.mxu0 %vm101_vm3, %v759_v48 }
 0xaf2   :  { %v235_v11 = vpop.f32.mrf.mxu1 }
 0xaf3   :  { %v236_v12 = vadd.f32 %v235_v11, %v1011_v30 }
 0xaf5   :  { %v248_v13 = vadd.f32 %v1023_v37, %v236_v12 }
 0xafa   :  { %v238_v41 = vpop.f32.mrf.mxu1 }
 0xafb   :  { %v239_v42 = vadd.f32 %v238_v41, %v1054_v63  ;;  %v661_v63 = vld [vmem:[%s1172_s4 + $0x18] sm:$0xff] }
 0xafd   :  { %v249_v43 = vadd.f32 %v1023_v37, %v239_v42 }
 0xb5c   :  { %v500_v50 = vpop.permute.xlu1 %499 }
 0xb5d   :  { %v502_v52 = vmul.f32 %v500_v50, %v497_v49 }
 0xb5f   :  { %v504_v53 = vadd.f32 %v503_v51, %v502_v52 }
 0xb61   :  { %506 = vrot.lane.b32.xlu2 %v504_v53, %s871_s3 }
 0xb68   :  { %v162_v24 = vpop.f32.mrf.mxu0 }
 0xb69   :  { %v233_v57 = vadd.f32 %v232_v26, %v162_v24 }
 0xb6b   :  { %v247_v58 = vadd.f32 %v1023_v37, %v233_v57  ;;  %v662_v37 = vld [vmem:[%s1172_s4 + $0x20] sm:$0x3f] }
 0xb6c   :  { %787 = vmatpush.msk.msrb.mxu2 %vm671_vm13, %v662_v37 }
 0xbbb   :  { %v507_v54 = vpop.permute.xlu2 %506 }
 0xbbc   :  { %784 = vmatmul.msk.f32.vlgmr.msrb.gmra.mxu3 %vm251_vm8, %v507_v54  ;;  %v660_v54 = vld [vmem:[%s1172_s4 + $0x10] sm:$0xff] }
 0xbbd   :  { %712 = vmatpush.msrb.mxu3 %v661_v63 }
 0xbbf   :  { %713 = vmatpush.msrb.mxu3 %v660_v54 }
 0xc3f   :  { %v527_v55 = vpop.f32.mrf.mxu3 }
 0xc40   :  { %v536_v56 = vadd.f32 %v1016_v31, %v527_v55  ;;  %v530_v59 = vadd.f32 %v527_v55, %v247_v58  ;;  %v659_v55 = vld [vmem:[%s1172_s4 + $0x8] sm:$0xff] }
 0xc41   :  { %714 = vmatpush.msrb.mxu3 %v659_v55 }
 0xc42   :  { %538 = vrot.lane.b32.xlu1 %v536_v56, %s870_s14  ;;  %v531_v60 = vsub.f32 0.0, %v530_v59  ;;  %v658_v56 = vld [vmem:[%s1172_s4] sm:$0xff] }
 0xc43   :  { %715 = vmatpush.msrb.mxu3 %v658_v56 }
 0xc44   :  { %v532_v61 = vmul.f32 1.442695, %v531_v60  ;;  %v666_v60 = vld [vmem:[%s1173_s2] sm:$0xff] }
 0xc46   :  { %846 = vpow2.f32 %v532_v61 }
 0xc4c   :  { %v847_v62 = vpop.eup %846 }
 0xc4d   :  { %v534_v0 = vadd.f32 1.0, %v847_v62 }
 0xc4f   :  { %848 = vrcp.f32 %v534_v0  ;;  %v813_v0 = vld [vmem:[%s1172_s4 + $0x28] ss:$0 sm:$0xff] }
 0xc55   :  { %v849_v1 = vpop.eup %848 }
 0xc56   :  { %v548_v18 = vsub.f32 1.0, %v849_v1  ;;  %v554_v20 = vmul.f32 %v849_v1, %v504_v53 }
 0xcb4   :  { %v539_v2 = vpop.permute.xlu1 %538 }
 0xcb5   :  { %v541_v3 = vmul.f32 %v849_v1, %v539_v2 }
 0xcb7   :  { %543 = vrot.lane.b32.xlu2 %v541_v3, %s870_s14 }
 0xd11   :  { %v544_v4 = vpop.permute.xlu2 %543 }
 0xd12   :  { %v546_v5 = vadd.f32 %v544_v4, %v247_v58  ;;  %v814_v4 = vld [vmem:[%s1172_s4 + $0x29] ss:$0 sm:$0xff] }
 0xd14   :  { %850 = vtanh.f32 %v546_v5 }
 0xd1a   :  { %v851_v6 = vpop.eup %850 }
 0xd1b   :  { %550 = vrot.lane.b32.xlu0 %v851_v6, %s871_s3 }
 0xd8d   :  { %v551_v19 = vpop.permute.xlu0 %550 }
 0xd8e   :  { %v553_v7 = vmul.f32 %v551_v19, %v548_v18  ;;  %v815_v18 = vld [vmem:[%s1172_s4 + $0x2a] ss:$0 sm:$0xff] }
 0xd90   :  { %v555_v22 = vadd.f32 %v554_v20, %v553_v7 }
 0xd92   :  { %557 = vrot.lane.b32.xlu1 %v555_v22, %s871_s3 }
 0xe04   :  { %v558_v8 = vpop.permute.xlu1 %557 }
 0xe05   :  { %785 = vmatmul.msk.f32.vlgmr.msra.gmra.mxu2 %vm251_vm8, %v558_v8 }
 0xe0d   :  { %788 = vmatmul.msk.f32.vlgmr.msrb.gmra.mxu2 %vm667_vm14, %v666_v60 }
 0xe88   :  { %v578_v9 = vpop.f32.mrf.mxu2 }
 0xe89   :  { %v587_v10 = vadd.f32 %v1016_v31, %v578_v9  ;;  %v581_v14 = vadd.f32 %v578_v9, %v248_v13 }
 0xe8b   :  { %589 = vrot.lane.b32.xlu2 %v587_v10, %s870_s14  ;;  %v582_v15 = vsub.f32 0.0, %v581_v14 }
 0xe8d   :  { %v583_v16 = vmul.f32 1.442695, %v582_v15 }
 0xe8f   :  { %852 = vpow2.f32 %v583_v16 }
 0xe90   :  { %v692_v62 = vpop.f32.mrf.mxu2 }
 0xe95   :  { %v853_v17 = vpop.eup %852 }
 0xe96   :  { %v585_v21 = vadd.f32 1.0, %v853_v17 }
 0xe98   :  { %854 = vrcp.f32 %v585_v21 }
 0xe9e   :  { %v855_v23 = vpop.eup %854 }
 0xe9f   :  { %v599_v30 = vsub.f32 1.0, %v855_v23  ;;  %v605_v34 = vmul.f32 %v855_v23, %v555_v22 }
 0xee5   :  { %v590_v25 = vpop.permute.xlu2 %589 }
 0xee6   :  { %v592_v27 = vmul.f32 %v855_v23, %v590_v25 }
 0xee8   :  { %594 = vrot.lane.b32.xlu0 %v592_v27, %s870_s14 }
 0xf5a   :  { %v595_v28 = vpop.permute.xlu0 %594 }
 0xf5b   :  { %v597_v29 = vadd.f32 %v595_v28, %v248_v13 }
 0xf5d   :  { %856 = vtanh.f32 %v597_v29 }
 0xf63   :  { %v857_v32 = vpop.eup %856 }
 0xf64   :  { %601 = vrot.lane.b32.xlu1 %v857_v32, %s871_s3 }
 0xfd6   :  { %v602_v33 = vpop.permute.xlu1 %601 }
 0xfd7   :  { %v604_v35 = vmul.f32 %v602_v33, %v599_v30 }
 0xfd9   :  { %v606_v36 = vadd.f32 %v605_v34, %v604_v35 }
 0xfdb   :  { %608 = vrot.lane.b32.xlu2 %v606_v36, %s871_s3 }
0x1035   :  { %v609_v38 = vpop.permute.xlu2 %608 }
0x1036   :  { %786 = vmatmul.msk.f32.vlgmr.msra.gmra.mxu3 %vm251_vm8, %v609_v38 }
0x10b9   :  { %v629_v39 = vpop.f32.mrf.mxu3 }
0x10ba   :  { %v638_v40 = vadd.f32 %v1016_v31, %v629_v39  ;;  %v632_v44 = vadd.f32 %v629_v39, %v249_v43 }
0x10bc   :  { %640 = vrot.lane.b32.xlu0 %v638_v40, %s870_s14  ;;  %v633_v45 = vsub.f32 0.0, %v632_v44 }
0x10be   :  { %v634_v46 = vmul.f32 1.442695, %v633_v45 }
0x10c0   :  { %858 = vpow2.f32 %v634_v46 }
0x10c6   :  { %v859_v47 = vpop.eup %858 }
0x10c7   :  { %v636_v48 = vadd.f32 1.0, %v859_v47 }
0x10c9   :  { %860 = vrcp.f32 %v636_v48 }
0x10cf   :  { %v861_v49 = vpop.eup %860 }
0x10d0   :  { %v650_v24 = vsub.f32 1.0, %v861_v49  ;;  %v656_v57 = vmul.f32 %v861_v49, %v606_v36 }
0x112e   :  { %v641_v50 = vpop.permute.xlu0 %640 }
0x112f   :  { %v643_v51 = vmul.f32 %v861_v49, %v641_v50 }
0x1131   :  { %645 = vrot.lane.b32.xlu1 %v643_v51, %s870_s14 }
0x11a3   :  { %v646_v31 = vpop.permute.xlu1 %645 }
0x11a4   :  { %v648_v52 = vadd.f32 %v646_v31, %v249_v43 }
0x11a6   :  { %862 = vtanh.f32 %v648_v52 }
0x11ac   :  { %v863_v53 = vpop.eup %862 }
0x11ad   :  { %652 = vrot.lane.b32.xlu2 %v863_v53, %s871_s3 }
0x1207   :  { %v653_v26 = vpop.permute.xlu2 %652 }
0x1208   :  { %v655_v58 = vmul.f32 %v653_v26, %v650_v24 }
0x120a   :  { %v657_v59 = vadd.f32 %v656_v57, %v655_v58 }
0x120c   :  { %696 = vrot.lane.b32.xlu0 %v657_v59, %s871_s3 }
0x127e   :  { %v697_v61 = vpop.permute.xlu0 %696 }
0x127f   :  { %789 = vmatmul.msk.f32.vlgmr.msrb.gmra.mxu3 %vm251_vm8, %v697_v61 }
0x1302   :  { %v717_v1 = vpop.f32.mrf.mxu3 }
0x1303   :  { %v718_v2 = vadd.f32 %v717_v1, %v692_v62 }
0x1305   :  { %v721_v3 = vadd.f32 %v813_v0, %v718_v2 }
0x1307   :  { %v722_v5 = vmax.f32 %v721_v3, 0.0 }
0x1309   :  { %v724_v6 = vmul.f32 %v814_v4, %v722_v5 }
0x130b   :  { %725 = vadd.xlane.f32.xlu1 %v724_v6 }
0x137e   :  { %v726_v19 = vpop.xlane.xlu1 %725 }
0x137f   :  { %v728_v20 = vadd.f32 %v815_v18, %v726_v19 }
0x1381   :  { %v729_v7 = vsub.f32 0.0, %v728_v20 }
0x1383   :  { %v730_v22 = vmul.f32 1.442695, %v729_v7 }
0x1385   :  { %864 = vpow2.f32 %v730_v22 }
0x138b   :  { %v865_v8 = vpop.eup %864 }
0x138c   :  { %v732_v9 = vadd.f32 1.0, %v865_v8 }
0x138e   :  { %866 = vrcp.f32 %v732_v9  ;;  %v744_v13 = vand.u32 2147483648, %v732_v9  ;;  %v742_v15 = vand.u32 2147483647, %v732_v9  ;;  %vm738_vm0 = vweird.f32 %v732_v9 }
0x1390   :  { %v745_v17 = vor.u32 1.1754944e-38, %v744_v13  ;;  %vm743_vm3 = vcmp.eq.f32.partialorder %v742_v15, 8.507059e+37 }
0x1394   :  { %v867_v10 = vpop.eup %866 }
0x1395   :  { %v734_v11 = vmul.f32 %v867_v10, %v732_v9  ;;  %vm739_vm15 = vweird.f32 %v867_v10 }
0x1396   :  { %vm740_vm2 = vmor %vm738_vm0, %vm739_vm15 }
0x1397   :  { %v735_v12 = vsub.f32 1.0, %v734_v11 }
0x1399   :  { %v736_v14 = vmul.f32 %v867_v10, %v735_v12 }
0x139b   :  { %v737_v16 = vadd.f32 %v867_v10, %v736_v14 }
0x139d   :  { %v741_v21 = vsel %vm740_vm2, %v867_v10, %v737_v16 }
0x139e   :  { %v746_v23 = vsel %vm743_vm3, %v745_v17, %v741_v21 }
0x139f   :  { %749 = vst.msk [vmem:[%s1174_s5] sm:$0xff] %vm748_vm1, %v746_v23 }

</bundles_post_ra>
